<compile_context>
chip_gen: v7x
topology: tpu7x:2x2x1
jax: 0.10.0
libtpu: 0.0.40
codegen_flags: <defaults>
</compile_context>

<pallas_src>
import functools

import jax
import jax.numpy as jnp
from jax.experimental import pallas as pl
from jax.experimental.pallas import tpu as pltpu

EPS = 1e-5  # nn.LayerNorm default


# ----------------------------------------------------------------------------- utils
def _pick_tile(n, preferred, align):
    """Largest tile <= preferred dividing n, preferring multiples of `align`."""
    if n <= preferred:
        return n
    t = (preferred // align) * align
    while t >= align:
        if n % t == 0:
            return t
        t -= align
    return n  # fall back: one block spanning the whole axis


@functools.lru_cache(maxsize=None)
def _vmem_capacity_bytes():
    try:
        info = pltpu.get_tpu_info()
        cap = int(getattr(info, "vmem_capacity_bytes", 0) or 0)
        if cap > 0:
            return cap
    except Exception:
        pass
    return 128 << 20


def _vmem_limit(block_bytes):
    # Double-buffered worst case + headroom, capped below the physical VMEM of
    # the current generation (64 MiB on v7x, 128 MiB on v5e/v6e).
    cap = _vmem_capacity_bytes()
    ceiling = min((cap * 3) // 4, 100 << 20)
    lo = min(32 << 20, ceiling)
    est = 2 * int(block_bytes) + (4 << 20)
    return int(min(max(est, lo), ceiling))


def _ln_f32(x, gamma, beta):
    mu = jnp.mean(x, axis=-1, keepdims=True)
    xc = x - mu
    var = jnp.mean(xc * xc, axis=-1, keepdims=True)
    return xc * jax.lax.rsqrt(var + EPS) * gamma + beta


# --------------------------------------------------------------- 1) LN(x) @ W + b
def _prenorm_linear_kernel(x_ref, gb_ref, w_ref, b_ref, o_ref, xn_ref, *,
                           compute_dtype):
    # LayerNorm is computed once per row block (j == 0) and cached in VMEM
    # scratch, reused for all weight-column tiles of that row block.
    @pl.when(pl.program_id(1) == 0)
    def _():
        x = x_ref[...].astype(jnp.float32)
        xn = _ln_f32(x, gb_ref[0:1, :].astype(jnp.float32),
                     gb_ref[1:2, :].astype(jnp.float32))
        xn_ref[...] = xn.astype(xn_ref.dtype)

    y = jnp.dot(xn_ref[...], w_ref[...].astype(compute_dtype),
                preferred_element_type=jnp.float32)          # MXU, f32 accumulate
    o_ref[...] = (y + b_ref[...].astype(jnp.float32)).astype(o_ref.dtype)


def prenorm_linear(x, gb, w, b, *, compute_dtype, out_dtype, row_tile, col_tile):
    R, D = x.shape
    Nout = w.shape[1]
    tm = _pick_tile(R, row_tile, 8)
    tn = _pick_tile(Nout, col_tile, 128)
    w_c = w.astype(compute_dtype)                 # pre-cast weight once
    b2 = b.reshape(1, Nout).astype(jnp.float32)

    wi = jnp.dtype(compute_dtype).itemsize
    oi = jnp.dtype(out_dtype).itemsize
    blk = (tm * D * x.dtype.itemsize + 2 * D * 4 + D * tn * wi + tn * 4
           + tm * tn * oi + tm * D * wi)
    cost = pl.CostEstimate(
        flops=2 * R * D * Nout, transcendentals=R,
        bytes_accessed=(R * D * x.dtype.itemsize + (R // tm) * D * Nout * wi
                        + Nout * 4 + 2 * D * 4 + R * Nout * oi))

    return pl.pallas_call(
        functools.partial(_prenorm_linear_kernel, compute_dtype=compute_dtype),
        out_shape=jax.ShapeDtypeStruct((R, Nout), out_dtype),
        grid_spec=pltpu.PrefetchScalarGridSpec(
            num_scalar_prefetch=0,
            grid=(R // tm, Nout // tn),
            in_specs=[
                pl.BlockSpec((tm, D), lambda i, j: (i, 0)),   # rows (held across j)
                pl.BlockSpec((2, D), lambda i, j: (0, 0)),    # fused gamma/beta
                pl.BlockSpec((D, tn), lambda i, j: (0, j)),   # weight column tile
                pl.BlockSpec((1, tn), lambda i, j: (0, j)),   # bias column tile
            ],
            out_specs=pl.BlockSpec((tm, tn), lambda i, j: (i, j)),
            scratch_shapes=[pltpu.VMEM((tm, D), compute_dtype)],  # cached LN(x)
        ),
        compiler_params=pltpu.CompilerParams(
            dimension_semantics=("parallel", "arbitrary"),
            vmem_limit_bytes=_vmem_limit(blk)),
        cost_estimate=cost,
    )(x, gb, w_c, b2)


# ------------------------------------------------------------- 2) attention core
def _attention_kernel(qkv_ref, idx_ref, o_ref, *, scale, heads, dim_head, q_tile,
                      compute_dtype, approx_recip):
    # qkv_ref block: (1, N, 3*inner) — all rows of this batch, q|k|v along lanes.
    # One grid step handles ALL heads of a q row-tile and writes a lane-dense
    # merged-head (tq, H*DH) slab (no split/merge transposes in HBM).
    inner = heads * dim_head
    idx = idx_ref[0, 0]
    start = pl.multiple_of(pl.program_id(1) * q_tile, q_tile)
    q_rows = qkv_ref[0, pl.ds(start, q_tile), :]            # (tq, 3*inner)
    kv_rows = qkv_ref[0]                                    # (N, 3*inner)

    outs = []
    for h in range(heads):                                  # static unroll
        lo = h * dim_head
        hi = lo + dim_head
        qh = (q_rows[:, lo:hi].astype(jnp.float32) * scale).astype(compute_dtype)
        kh = kv_rows[:, inner + lo:inner + hi].astype(compute_dtype)
        vh = kv_rows[:, 2 * inner + lo:2 * inner + hi].astype(compute_dtype)
        dots = jax.lax.dot_general(qh, kh, (((1,), (1,)), ((), ())),
                                   preferred_element_type=jnp.float32)  # (tq, N)
        m = jnp.max(dots, axis=-1, keepdims=True)
        p = jnp.exp(dots - m)
        s = jnp.sum(p, axis=-1, keepdims=True)
        if approx_recip:
            attn = p * (pl.reciprocal(s, approx=True) * idx)   # softmax * idx (EUP)
        else:
            attn = p * (idx / s)                               # exact (f32 check)
        outs.append(jnp.dot(attn.astype(compute_dtype), vh,
                            preferred_element_type=jnp.float32))  # (tq, DH)
    o_ref[0] = jnp.concatenate(outs, axis=-1).astype(o_ref.dtype)


def attention_core(qkv, idx_arr, *, heads, dim_head, scale, compute_dtype,
                   out_dtype, q_tile):
    # TODO(synk): for long sequences convert to KV-tiled online softmax (flash
    # style) so VMEM does not grow with N (required for v7x at large contexts).
    B, N, three_inner = qkv.shape
    inner = heads * dim_head
    assert three_inner == 3 * inner
    tq = _pick_tile(N, q_tile, 8)
    ii = qkv.dtype.itemsize
    oi = jnp.dtype(out_dtype).itemsize
    blk = N * 3 * inner * ii + tq * inner * oi + 2 * tq * N * 4 + tq * inner * 4
    cost = pl.CostEstimate(
        flops=4 * B * heads * N * N * dim_head,
        transcendentals=B * heads * N * N,
        bytes_accessed=B * N * 3 * inner * ii + B * N * inner * oi)

    kernel = functools.partial(
        _attention_kernel, scale=scale, heads=heads, dim_head=dim_head, q_tile=tq,
        compute_dtype=compute_dtype,
        approx_recip=jnp.dtype(compute_dtype) != jnp.dtype(jnp.float32))

    return pl.pallas_call(
        kernel,
        out_shape=jax.ShapeDtypeStruct((B, N, inner), out_dtype),
        grid_spec=pltpu.PrefetchScalarGridSpec(
            num_scalar_prefetch=0,
            grid=(B, N // tq),
            in_specs=[
                pl.BlockSpec((1, N, 3 * inner), lambda b, i: (b, 0, 0)),  # qkv rows
                pl.BlockSpec(memory_space=pltpu.MemorySpace.SMEM),        # idx scalar
            ],
            out_specs=pl.BlockSpec((1, tq, inner), lambda b, i: (b, i, 0)),
        ),
        compiler_params=pltpu.CompilerParams(
            dimension_semantics=("parallel", "parallel"),
            vmem_limit_bytes=_vmem_limit(blk)),
        cost_estimate=cost,
    )(qkv, idx_arr)


# ------------------------------------------------------------ 3) (x @ W + b) * idx
def _linear_scale_kernel(x_ref, w_ref, b_ref, idx_ref, o_ref, *, compute_dtype):
    idx = idx_ref[0, 0]
    y = jnp.dot(x_ref[...].astype(compute_dtype), w_ref[...].astype(compute_dtype),
                preferred_element_type=jnp.float32)
    o_ref[...] = ((y + b_ref[...].astype(jnp.float32)) * idx).astype(o_ref.dtype)


def linear_scale(x, w, b, idx_arr, *, compute_dtype, out_dtype, row_tile, col_tile):
    R, Din = x.shape
    Nout = w.shape[1]
    tm = _pick_tile(R, row_tile, 8)
    tn = _pick_tile(Nout, col_tile, 128)
    ni, nj = R // tm, Nout // tn
    w_c = w.astype(compute_dtype)
    b2 = b.reshape(1, Nout).astype(jnp.float32)

    xi = x.dtype.itemsize
    wi = jnp.dtype(compute_dtype).itemsize
    oi = jnp.dtype(out_dtype).itemsize
    # Pick the grid order that minimizes HBM traffic (avoid weight re-streaming
    # R/tm times when the weight matrix dominates the activations).
    row_outer_bytes = R * Din * xi + ni * Din * Nout * wi
    col_outer_bytes = nj * R * Din * xi + Din * Nout * wi
    if row_outer_bytes <= col_outer_bytes:
        grid = (ni, nj)
        x_map = lambda i, j: (i, 0)
        w_map = lambda i, j: (0, j)
        b_map = lambda i, j: (0, j)
        o_map = lambda i, j: (i, j)
    else:
        grid = (nj, ni)
        x_map = lambda j, i: (i, 0)
        w_map = lambda j, i: (0, j)
        b_map = lambda j, i: (0, j)
        o_map = lambda j, i: (i, j)

    blk = tm * Din * xi + Din * tn * wi + tn * 4 + tm * tn * oi
    cost = pl.CostEstimate(
        flops=2 * R * Din * Nout, transcendentals=0,
        bytes_accessed=min(row_outer_bytes, col_outer_bytes) + Nout * 4
                       + R * Nout * oi)

    return pl.pallas_call(
        functools.partial(_linear_scale_kernel, compute_dtype=compute_dtype),
        out_shape=jax.ShapeDtypeStruct((R, Nout), out_dtype),
        grid_spec=pltpu.PrefetchScalarGridSpec(
            num_scalar_prefetch=0,
            grid=grid,
            in_specs=[
                pl.BlockSpec((tm, Din), x_map),
                pl.BlockSpec((Din, tn), w_map),
                pl.BlockSpec((1, tn), b_map),
                pl.BlockSpec(memory_space=pltpu.MemorySpace.SMEM),   # idx scalar
            ],
            out_specs=pl.BlockSpec((tm, tn), o_map),
        ),
        compiler_params=pltpu.CompilerParams(
            dimension_semantics=("parallel", "parallel"),
            vmem_limit_bytes=_vmem_limit(blk)),
        cost_estimate=cost,
    )(x, w_c, b2, idx_arr)


# --------------------------------------------- 4) fused PreNorm FFN + residual * idx
def _prenorm_ffn_kernel(x_ref, gb_ref, w1_ref, b1_ref, w2_ref, b2_ref, idx_ref,
                        o_ref, xn_ref, acc_ref, *, compute_dtype):
    h = pl.program_id(1)

    @pl.when(h == 0)
    def _():
        x = x_ref[...].astype(jnp.float32)
        xn = _ln_f32(x, gb_ref[0:1, :].astype(jnp.float32),
                     gb_ref[1:2, :].astype(jnp.float32))
        xn_ref[...] = xn.astype(xn_ref.dtype)        # cached LN(x)
        acc_ref[...] = jnp.zeros_like(acc_ref)

    hidden = jnp.dot(xn_ref[...], w1_ref[...].astype(compute_dtype),
                     preferred_element_type=jnp.float32)
    hidden = hidden + b1_ref[...].astype(jnp.float32)
    # TODO(synk): PyTorch nn.GELU() is erf-based; tanh approximation used here
    # (EUP-friendly on TPU), max deviation ~1e-3.
    g = jax.nn.gelu(hidden, approximate=True)
    acc_ref[...] += jnp.dot(g.astype(compute_dtype), w2_ref[...].astype(compute_dtype),
                            preferred_element_type=jnp.float32)

    @pl.when(h == pl.num_programs(1) - 1)
    def _():
        idx = idx_ref[0, 0]
        y = (acc_ref[...] + b2_ref[...].astype(jnp.float32)
             + x_ref[...].astype(jnp.float32)) * idx       # Residual, then * idx
        o_ref[...] = y.astype(o_ref.dtype)


def prenorm_ffn(x, gb, w1, b1, w2, b2, idx_arr, *, compute_dtype, out_dtype,
                row_tile, hid_tile):
    R, D = x.shape
    Hd = w1.shape[1]
    tm = _pick_tile(R, row_tile, 8)
    th = _pick_tile(Hd, hid_tile, 128)
    w1c = w1.astype(compute_dtype)
    w2c = w2.astype(compute_dtype)
    b1_2 = b1.reshape(1, Hd).astype(jnp.float32)
    b2_2 = b2.reshape(1, D).astype(jnp.float32)

    wi = jnp.dtype(compute_dtype).itemsize
    oi = jnp.dtype(out_dtype).itemsize
    blk = (tm * D * x.dtype.itemsize + 2 * D * 4 + D * th * wi + th * 4
           + th * D * wi + D * 4 + tm * D * oi + tm * D * (wi + 4) + tm * th * 4)
    cost = pl.CostEstimate(
        flops=4 * R * D * Hd, transcendentals=R * Hd + R,
        bytes_accessed=(R * D * x.dtype.itemsize + (R // tm) * 2 * D * Hd * wi
                        + (Hd + 3 * D) * 4 + R * D * oi))

    return pl.pallas_call(
        functools.partial(_prenorm_ffn_kernel, compute_dtype=compute_dtype),
        out_shape=jax.ShapeDtypeStruct((R, D), out_dtype),
        grid_spec=pltpu.PrefetchScalarGridSpec(
            num_scalar_prefetch=0,
            grid=(R // tm, Hd // th),                       # hidden dim tiled
            in_specs=[
                pl.BlockSpec((tm, D), lambda i, h: (i, 0)),
                pl.BlockSpec((2, D), lambda i, h: (0, 0)),  # fused gamma/beta
                pl.BlockSpec((D, th), lambda i, h: (0, h)), # W1 hidden tile
                pl.BlockSpec((1, th), lambda i, h: (0, h)),
                pl.BlockSpec((th, D), lambda i, h: (h, 0)), # W2 hidden tile
                pl.BlockSpec((1, D), lambda i, h: (0, 0)),
                pl.BlockSpec(memory_space=pltpu.MemorySpace.SMEM),   # idx scalar
            ],
            out_specs=pl.BlockSpec((tm, D), lambda i, h: (i, 0)),
            scratch_shapes=[pltpu.VMEM((tm, D), compute_dtype),      # cached LN(x)
                            pltpu.VMEM((tm, D), jnp.float32)],       # f32 accumulator
        ),
        compiler_params=pltpu.CompilerParams(
            dimension_semantics=("parallel", "arbitrary"),
            vmem_limit_bytes=_vmem_limit(blk)),
        cost_estimate=cost,
    )(x, gb, w1c, b1_2, w2c, b2_2, idx_arr)


# ------------------------------------------------------------------ full forward
def transformer_forward(x, idx, params, *, heads, dim_head, mask=None,
                        compute_dtype=jnp.bfloat16, row_tile=256, col_tile=512,
                        hid_tile=512):
    """Transformer.forward(x, idx, mask) with mask=None, Pallas-TPU kernels."""
    # TODO(synk): the mask-is-not-None path (fine_tune1/fine_tune2 MLPs on the
    # mask, F.pad + outer-product attention masking) is not implemented in Pallas.
    assert mask is None, "only the mask=None forward path is implemented"
    B, N, D = x.shape
    inner = heads * dim_head
    scale = float(D) ** -0.5            # PyTorch code uses dim, not dim_head
    idx_arr = jnp.asarray(idx, dtype=jnp.float32).reshape(1, 1)

    for layer in params:
        xf = x.reshape(B * N, D)

        # ---- Residual3(PreNorm3(Attention)): x = Attention(LN(x), idx), NO skip ----
        qkv = prenorm_linear(xf, layer["ln1"], layer["wqkv"], layer["bqkv"],
                             compute_dtype=compute_dtype, out_dtype=compute_dtype,
                             row_tile=row_tile, col_tile=col_tile)
        # (B*N, 3*inner) -> (B, N, 3*inner) is a leading-dim reshape (no copy);
        # the attention kernel slices q/k/v and heads in-kernel.
        o = attention_core(qkv.reshape(B, N, 3 * inner), idx_arr,
                           heads=heads, dim_head=dim_head, scale=scale,
                           compute_dtype=compute_dtype, out_dtype=compute_dtype,
                           q_tile=row_tile)
        x = linear_scale(o.reshape(B * N, inner), layer["wo"], layer["bo"], idx_arr,
                         compute_dtype=compute_dtype, out_dtype=x.dtype,
                         row_tile=row_tile, col_tile=col_tile).reshape(B, N, D)

        # ---- (Residual(PreNorm(FeedForward))(x)) * idx ----
        x = prenorm_ffn(x.reshape(B * N, D), layer["ln2"], layer["w1"], layer["b1"],
                        layer["w2"], layer["b2"], idx_arr,
                        compute_dtype=compute_dtype, out_dtype=x.dtype,
                        row_tile=row_tile, hid_tile=hid_tile).reshape(B, N, D)
    return x


# ----------------------------------------------------------------- pure-JAX reference
def _ln_ref(x, gamma, beta):
    mu = jnp.mean(x, axis=-1, keepdims=True)
    var = jnp.mean((x - mu) ** 2, axis=-1, keepdims=True)
    return (x - mu) * jax.lax.rsqrt(var + EPS) * gamma + beta


def transformer_ref(x, idx, params, *, heads, dim_head):
    B, N, D = x.shape
    inner = heads * dim_head
    scale = float(D) ** -0.5
    x = x.astype(jnp.float32)
    for layer in params:
        xn = _ln_ref(x, layer["ln1"][0], layer["ln1"][1])
        qkv = xn @ layer["wqkv"] + layer["bqkv"]
        q, k, v = jnp.split(qkv, 3, axis=-1)

        def heads_of(t):
            return t.reshape(B, N, heads, dim_head).transpose(0, 2, 1, 3)

        q, k, v = heads_of(q), heads_of(k), heads_of(v)
        dots = jnp.einsum("bhid,bhjd->bhij", q, k) * scale
        attn = jax.nn.softmax(dots, axis=-1) * idx
        o = jnp.einsum("bhij,bhjd->bhid", attn, v)
        o = o.transpose(0, 2, 1, 3).reshape(B, N, inner)
        x = (o @ layer["wo"] + layer["bo"]) * idx          # Residual3: no skip add

        xn2 = _ln_ref(x, layer["ln2"][0], layer["ln2"][1])
        h = jax.nn.gelu(xn2 @ layer["w1"] + layer["b1"], approximate=True)
        ff = h @ layer["w2"] + layer["b2"]
        x = (ff + x) * idx                                 # Residual, then * idx
    return x


# ------------------------------------------------------------------------ params
def init_params(key, depth, dim, heads, dim_head, mlp_dim):
    inner = heads * dim_head
    params = []
    for _ in range(depth):
        key, *ks = jax.random.split(key, 11)

        def nrm(k, shape, scl):
            return jax.random.normal(k, shape, jnp.float32) * scl

        ln1 = jnp.stack([1.0 + 0.1 * jax.random.normal(ks[0], (dim,)),
                         0.05 * jax.random.normal(ks[1], (dim,))]).astype(jnp.float32)
        ln2 = jnp.stack([1.0 + 0.1 * jax.random.normal(ks[2], (dim,)),
                         0.05 * jax.random.normal(ks[3], (dim,))]).astype(jnp.float32)
        params.append(dict(
            ln1=ln1,
            wqkv=nrm(ks[4], (dim, 3 * inner), dim ** -0.5),
            bqkv=jnp.zeros((3 * inner,), jnp.float32),   # to_qkv has bias=False
            wo=nrm(ks[5], (inner, dim), inner ** -0.5),
            bo=nrm(ks[6], (dim,), 0.02),
            ln2=ln2,
            w1=nrm(ks[7], (dim, mlp_dim), dim ** -0.5),
            b1=nrm(ks[8], (mlp_dim,), 0.02),
            w2=nrm(ks[9], (mlp_dim, dim), mlp_dim ** -0.5),
            b2=jnp.zeros((dim,), jnp.float32),
        ))
    return params


if __name__ == "__main__":
    key = jax.random.PRNGKey(0)
    kx, kp = jax.random.split(key)

    B, S = 2, 8
    dim, heads, dim_head, mlp_dim, depth = 32, 4, 8, 64, 2
    idx = 0.9   # scalar coefficient (the `idx` argument of Transformer.forward)

    x = jax.random.normal(kx, (B, S, dim), dtype=jnp.float32)
    params = init_params(kp, depth, dim, heads, dim_head, mlp_dim)

    ref = transformer_ref(x, idx, params, heads=heads, dim_head=dim_head)

    # f32 MXU path: validates the kernel math against the pure-JAX reference
    # (exact softmax reciprocal is used in this path).
    out_f32 = transformer_forward(x, idx, params, heads=heads, dim_head=dim_head,
                                  compute_dtype=jnp.float32)
    out_f32 = jax.block_until_ready(out_f32)
    assert out_f32.shape == (B, S, dim)
    assert jnp.allclose(out_f32, ref, atol=1e-4, rtol=1e-4), "f32 kernel mismatch"

    # Default bf16 MXU path (full-rate MXU, f32 accumulation): only the GEMM
    # operands and activation intermediates are bf16, so the deviation from the
    # f32 reference is the expected MXU-rounding envelope across 2 layers.
    out_bf16 = transformer_forward(x, idx, params, heads=heads, dim_head=dim_head,
                                   compute_dtype=jnp.bfloat16)
    out_bf16 = jax.block_until_ready(out_bf16)
    assert out_bf16.shape == (B, S, dim)
    assert jnp.allclose(out_bf16, ref, atol=1e-1, rtol=1e-1), "bf16 kernel mismatch"

    print("KERNEL_OK")
</pallas_src>

<mosaic_0001>
module attributes {stable_mosaic.version = 11 : i64} {
  func.func @_prenorm_linear_kernel(%arg0: i32, %arg1: i32, %arg2: memref<16x32xf32, #tpu.memory_space<vmem>>, %arg3: memref<2x32xf32, #tpu.memory_space<vmem>>, %arg4: memref<32x96xf32, #tpu.memory_space<vmem>>, %arg5: memref<1x96xf32, #tpu.memory_space<vmem>>, %arg6: memref<16x96xf32, #tpu.memory_space<vmem>>, %arg7: memref<16x32xf32, #tpu.memory_space<vmem>>) attributes {dimension_semantics = [#tpu.dimension_semantics<parallel>, #tpu.dimension_semantics<arbitrary>], iteration_bounds = array<i64: 1, 1>, scalar_prefetch = 0 : i64, scratch_operands = 1 : i64, tpu.core_type = #tpu.core_type<tc>, window_params = [{transform_indices = @transform_0, window_bounds = array<i64: 16, 32>}, {pipeline_mode = #tpu.pipeline_mode<synchronous>, transform_indices = @transform_1, window_bounds = array<i64: 2, 32>}, {transform_indices = @transform_2, window_bounds = array<i64: 32, 96>}, {transform_indices = @transform_3, window_bounds = array<i64: 1, 96>}, {transform_indices = @transform_4, window_bounds = array<i64: 16, 96>}]} {
    %c0_i32 = arith.constant 0 : i32
    %0 = arith.cmpi eq, %arg1, %c0_i32 : i32
    %1 = arith.extui %0 : i1 to i32
    %c0_i32_0 = arith.constant 0 : i32
    %2 = arith.cmpi ne, %1, %c0_i32_0 : i32
    scf.if %2 {
      %c0_8 = arith.constant 0 : index
      %c0_9 = arith.constant 0 : index
      %10 = vector.load %arg2[%c0_8, %c0_9] : memref<16x32xf32, #tpu.memory_space<vmem>>, vector<16x32xf32>
      %c0_10 = arith.constant 0 : index
      %c0_11 = arith.constant 0 : index
      %11 = vector.load %arg3[%c0_10, %c0_11] : memref<2x32xf32, #tpu.memory_space<vmem>>, vector<1x32xf32>
      %c1 = arith.constant 1 : index
      %c0_12 = arith.constant 0 : index
      %12 = vector.load %arg3[%c1, %c0_12] : memref<2x32xf32, #tpu.memory_space<vmem>>, vector<1x32xf32>
      %cst_13 = arith.constant dense<0.000000e+00> : vector<16xf32>
      %13 = vector.multi_reduction <add>, %10, %cst_13 [1] : vector<16x32xf32> to vector<16xf32>
      %14 = vector.shape_cast %13 : vector<16xf32> to vector<16x1xf32>
      %cst_14 = arith.constant 3.200000e+01 : f32
      %15 = vector.broadcast %cst_14 : f32 to vector<16x1xf32>
      %16 = arith.divf %14, %15 : vector<16x1xf32>
      %17 = vector.broadcast %16 : vector<16x1xf32> to vector<16x32xf32>
      %18 = arith.subf %10, %17 : vector<16x32xf32>
      %19 = arith.mulf %18, %18 : vector<16x32xf32>
      %cst_15 = arith.constant dense<0.000000e+00> : vector<16xf32>
      %20 = vector.multi_reduction <add>, %19, %cst_15 [1] : vector<16x32xf32> to vector<16xf32>
      %21 = vector.shape_cast %20 : vector<16xf32> to vector<16x1xf32>
      %cst_16 = arith.constant 3.200000e+01 : f32
      %22 = vector.broadcast %cst_16 : f32 to vector<16x1xf32>
      %23 = arith.divf %21, %22 : vector<16x1xf32>
      %cst_17 = arith.constant 9.99999974E-6 : f32
      %24 = vector.broadcast %cst_17 : f32 to vector<16x1xf32>
      %25 = arith.addf %23, %24 : vector<16x1xf32>
      %26 = math.rsqrt %25 : vector<16x1xf32>
      %27 = vector.broadcast %26 : vector<16x1xf32> to vector<16x32xf32>
      %28 = arith.mulf %18, %27 : vector<16x32xf32>
      %29 = vector.broadcast %11 : vector<1x32xf32> to vector<16x32xf32>
      %30 = arith.mulf %28, %29 : vector<16x32xf32>
      %31 = vector.broadcast %12 : vector<1x32xf32> to vector<16x32xf32>
      %32 = arith.addf %30, %31 : vector<16x32xf32>
      %c0_18 = arith.constant 0 : index
      %c0_19 = arith.constant 0 : index
      %33 = vector.load %arg7[%c0_18, %c0_19] : memref<16x32xf32, #tpu.memory_space<vmem>>, vector<16x32xf32>
      tpu.vector_store %arg7[%c0_18, %c0_19], %32 {strides = array<i32>} : memref<16x32xf32, #tpu.memory_space<vmem>>, vector<16x32xf32>,
    } else {
    }
    %c0 = arith.constant 0 : index
    %c0_1 = arith.constant 0 : index
    %3 = vector.load %arg7[%c0, %c0_1] : memref<16x32xf32, #tpu.memory_space<vmem>>, vector<16x32xf32>
    %c0_2 = arith.constant 0 : index
    %c0_3 = arith.constant 0 : index
    %4 = vector.load %arg4[%c0_2, %c0_3] : memref<32x96xf32, #tpu.memory_space<vmem>>, vector<32x96xf32>
    %cst = arith.constant dense<0.000000e+00> : vector<16x96xf32>
    %5 = tpu.matmul %3, %4, %cst {dimension_numbers = #tpu.dot_dimension_numbers<[1], [0], [0], [1], [0, 0, 1, 1], [], []>} : vector<16x32xf32>, vector<32x96xf32>, vector<16x96xf32> -> vector<16x96xf32>
    %c0_4 = arith.constant 0 : index
    %c0_5 = arith.constant 0 : index
    %6 = vector.load %arg5[%c0_4, %c0_5] : memref<1x96xf32, #tpu.memory_space<vmem>>, vector<1x96xf32>
    %7 = vector.broadcast %6 : vector<1x96xf32> to vector<16x96xf32>
    %8 = arith.addf %5, %7 : vector<16x96xf32>
    %c0_6 = arith.constant 0 : index
    %c0_7 = arith.constant 0 : index
    %9 = vector.load %arg6[%c0_6, %c0_7] : memref<16x96xf32, #tpu.memory_space<vmem>>, vector<16x96xf32>
    tpu.vector_store %arg6[%c0_6, %c0_7], %8 {strides = array<i32>} : memref<16x96xf32, #tpu.memory_space<vmem>>, vector<16x96xf32>,
    return
  }
  func.func @transform_0(%arg0: i32, %arg1: i32) -> (i32, i32) {
    %c0_i32 = arith.constant 0 : i32
    %c0_i32_0 = arith.constant 0 : i32
    return %arg0, %c0_i32 : i32, i32
  }
  func.func @transform_1(%arg0: i32, %arg1: i32) -> (i32, i32) {
    %c0_i32 = arith.constant 0 : i32
    %c0_i32_0 = arith.constant 0 : i32
    %c0_i32_1 = arith.constant 0 : i32
    return %c0_i32, %c0_i32_0 : i32, i32
  }
  func.func @transform_2(%arg0: i32, %arg1: i32) -> (i32, i32) {
    %c0_i32 = arith.constant 0 : i32
    %c0_i32_0 = arith.constant 0 : i32
    return %c0_i32, %arg1 : i32, i32
  }
  func.func @transform_3(%arg0: i32, %arg1: i32) -> (i32, i32) {
    %c0_i32 = arith.constant 0 : i32
    %c0_i32_0 = arith.constant 0 : i32
    return %c0_i32, %arg1 : i32, i32
  }
  func.func @transform_4(%arg0: i32, %arg1: i32) -> (i32, i32) {
    %c0_i32 = arith.constant 0 : i32
    return %arg0, %arg1 : i32, i32
  }
}

</mosaic_0001>

<bundles_post_ra>
// kernel: tpu_custom_call.1
= control target key start
LH: loop header
LB: loop body
LE: loop exit
PB: predicated region body
PF: predicated region fallthrough
CT: control target
= control target key end

     0   :  { %9 = vsyncpa [#allocation4], 0  ;;  %s415_s0 = inlined_call_operand.hbm [shape: f32[16,32], index: 0, kind: input, shape index: {}]   ;;  %s416_s1 = inlined_call_operand.vmem [shape: f32[2,32], index: 1, kind: input, shape index: {}]   ;;  %s417_s2 = inlined_call_operand.hbm [shape: f32[32,96], index: 2, kind: input, shape index: {}]   ;;  %s418_s3 = inlined_call_operand.vmem [shape: f32[1,96], index: 3, kind: input, shape index: {}]   ;;  %s419_s4 = inlined_call_operand.hbm [shape: f32[16,96], index: 4, kind: output, shape index: {}]  }
   0x1   :  { %10 = vsyncpa [#allocation7], 0 }
   0x2   :  { %11 = vsyncpa [#allocation5], 0  ;;  %s323_s15 = smov [#allocation3]   ;;  %s251_s19 = scalar_lea.hbm %s415_s0, 256 }
   0x3   :  { %s17_s16 = sshll.u32 %s323_s15, 4  ;;  %p252_p0 = scmp.ne.s32.totalorder %s415_s0, %s251_s19  ;;  %s18_s16 = int_to_ptr.vmem [resolvable:$true] %s17_s16 }
   0x4   :  { %p255_p1 = scmp.lt.u32.totalorder %s251_s19, %s415_s0 }
   0x6   :  { %p257_p2 = pnand %p255_p1, %p252_p0 }
   0x8   :  { %260 = shalt.err (!%p257_p2)
}
   0x9   :  { %s261_s24 = scalar_lea.vmem %s18_s16, 256  ;;  %p266_p4 = scmp.lt.s32.totalorder %s18_s16, %s18_s16 }
   0xa   :  { %p262_p3 = scmp.ne.s32.totalorder %s18_s16, %s261_s24  ;;  %p267_p5 = scmp.lt.s32.totalorder %s261_s24, %s261_s24 }
   0xc   :  { %p268_p6 = por %p267_p5, %p266_p4 }
   0xe   :  { %p269_p7 = pnand %p268_p6, %p262_p3 }
  0x10   :  { %272 = shalt.err (!%p269_p7)
}
  0x11   :  { %s324_s25 = smov 128   ;;  %s325_s26 = smov 8  }
  0x12   :  { %23 = dma.hbm_to_vmem [thread:$0]  %s415_s0, 256, %s18_s16, [#allocation4], %s324_s25, %s324_s25, %s325_s26  }
  0x13   :  { %s326_s29 = smov [#allocation6]   ;;  %s273_s7 = scalar_lea.hbm %s417_s2, 512 }
  0x14   :  { %s31_s30 = sshll.u32 %s326_s29, 4  ;;  %p274_p8 = scmp.ne.s32.totalorder %s417_s2, %s273_s7  ;;  %s32_s30 = int_to_ptr.vmem [resolvable:$true] %s31_s30 }
  0x15   :  { %p277_p9 = scmp.lt.u32.totalorder %s273_s7, %s417_s2 }
  0x17   :  { %p279_p10 = pnand %p277_p9, %p274_p8 }
  0x19   :  { %282 = shalt.err (!%p279_p10)
}
  0x1a   :  { %s283_s12 = scalar_lea.vmem %s32_s30, 512  ;;  %p288_p12 = scmp.lt.s32.totalorder %s32_s30, %s32_s30 }
  0x1b   :  { %p284_p11 = scmp.ne.s32.totalorder %s32_s30, %s283_s12  ;;  %p289_p13 = scmp.lt.s32.totalorder %s283_s12, %s283_s12 }
  0x1d   :  { %p290_p0 = por %p289_p13, %p288_p12 }
  0x1f   :  { %p291_p1 = pnand %p290_p0, %p284_p11 }
  0x21   :  { %294 = shalt.err (!%p291_p1)
}
  0x22   :  { %37 = dma.hbm_to_vmem [thread:$0]  %s417_s2, 512, %s32_s30, [#allocation7], %s324_s25, %s324_s25, %s325_s26  }
  0x23   :  { %317 = dma.done.wait [#allocation4], 256  }
  0x24   :  { %318 = vsyncadd [#allocation4], 4294967040 }
  0x25   :  { %319 = dma.done.wait [#allocation7], 512  }
  0x26   :  { %320 = vsyncadd [#allocation7], 4294966784  ;;  %vm54_vm0 = vcmask 261120   ;;  %v50_v0 = vld [vmem:[#allocation3] sm:$0xff]  ;;  %v51_v1 = vld [vmem:[#allocation3 + $0x8] sm:$0xff]  ;;  %vm191_vm1 = vcmask 785408  }
  0x27   :  { %v55_v2 = vsel %vm54_vm0, %v50_v0, 0.0  ;;  %v58_v3 = vsel %vm54_vm0, %v51_v1, 0.0  ;;  %v98_v14 = vld [vmem:[#allocation6] sm:$0xff]  ;;  %v99_v15 = vld [vmem:[#allocation6 + $0x8] sm:$0xff]  ;;  %v100_v17 = vld [vmem:[#allocation6 + $0x10] sm:$0xff] }
  0x28   :  { %56 = vadd.xlane.f32.xlu0 %v55_v2  ;;  %v234_v16 = vpack.c.bf16 %v99_v15, %v98_v14  ;;  %v101_v18 = vld [vmem:[#allocation6 + $0x18] sm:$0xff]  ;;  %v212_v27 = vld [vmem:[%s416_s1] ss:$0 sm:$0xff]  ;;  %v213_v29 = vld [vmem:[%s416_s1 + $0x1] ss:$0 sm:$0xff]  ;;  %s327_s1 = smov [#allocation8]  }
  0x29   :  { %v238_v19 = vpack.c.bf16 %v101_v18, %v100_v17  ;;  %v214_v38 = vld [vmem:[%s418_s3] ss:$0 sm:$0xff]  ;;  %s199_s19 = sshll.u32 %s327_s1, 4  ;;  %s200_s19 = int_to_ptr.vmem [resolvable:$true] %s199_s19 }
  0x2a   :  { %235 = vmatprep.subr.bf16.mxu0 %v234_v16  ;;  %s295_s20 = scalar_lea.vmem %s200_s19, 256  ;;  %p300_p3 = scmp.lt.s32.totalorder %s200_s19, %s200_s19 }
  0x2b   :  { %237 = vmatpush3.bf16.msra.mxu0 %v234_v16  ;;  %p296_p2 = scmp.ne.s32.totalorder %s200_s19, %s295_s20  ;;  %p301_p4 = scmp.lt.s32.totalorder %s295_s20, %s295_s20 }
  0x2c   :  { %59 = vadd.xlane.f32.xlu0 %v58_v3  ;;  %239 = vmatprep.subr.bf16.mxu0 %v238_v19 }
  0x2d   :  { %p302_p5 = por %p301_p4, %p300_p3 }
  0x2f   :  { %241 = vmatpush3.bf16.msra.mxu0 %v238_v19  ;;  %p303_p6 = pnand %p302_p5, %p296_p2 }
  0xb5   :  { %v57_v4 = vpop.xlane.xlu0 %56 }
  0xb6   :  { %v62_v5 = vmul.f32 0.03125, %v57_v4 }
  0xb8   :  { %v64_v6 = vsub.f32 %v50_v0, %v62_v5 }
  0xb9   :  { %v60_v7 = vpop.xlane.xlu0 %59 }
  0xba   :  { %v63_v8 = vmul.f32 0.03125, %v60_v7  ;;  %v66_v9 = vmul.f32 %v64_v6, %v64_v6 }
  0xbc   :  { %v65_v10 = vsub.f32 %v51_v1, %v63_v8  ;;  %v68_v11 = vsel %vm54_vm0, %v66_v9, 0.0 }
  0xbd   :  { %69 = vadd.xlane.f32.xlu1 %v68_v11 }
  0xbe   :  { %v67_v12 = vmul.f32 %v65_v10, %v65_v10 }
  0xc0   :  { %v71_v13 = vsel %vm54_vm0, %v67_v12, 0.0 }
  0xc1   :  { %72 = vadd.xlane.f32.xlu1 %v71_v13 }
 0x14a   :  { %v70_v20 = vpop.xlane.xlu1 %69 }
 0x14b   :  { %v74_v21 = vmul.f32 0.03125, %v70_v20 }
 0x14d   :  { %v76_v22 = vadd.f32 1e-05, %v74_v21 }
 0x14e   :  { %v73_v23 = vpop.xlane.xlu1 %72 }
 0x14f   :  { %247 = vrsqrt.f32 %v76_v22  ;;  %v75_v24 = vmul.f32 0.03125, %v73_v23 }
 0x151   :  { %v77_v25 = vadd.f32 1e-05, %v75_v24 }
 0x153   :  { %249 = vrsqrt.f32 %v77_v25 }
 0x159   :  { %v248_v26 = vpop.eup %247 }
 0x15a   :  { %v80_v28 = vmul.f32 %v248_v26, %v64_v6 }
 0x15c   :  { %v86_v30 = vmul.f32 %v212_v27, %v80_v28 }
 0x15d   :  { %v250_v31 = vpop.eup %249 }
 0x15e   :  { %v92_v32 = vadd.f32 %v213_v29, %v86_v30  ;;  %v81_v33 = vmul.f32 %v250_v31, %v65_v10 }
 0x160   :  { %94 = vst.msk [vmem:[#allocation2] sm:$0xff] %vm54_vm0, %v92_v32  ;;  %v87_v34 = vmul.f32 %v212_v27, %v81_v33 }
 0x162   :  { %v93_v35 = vadd.f32 %v213_v29, %v87_v34 }
 0x164   :  { %95 = vst.msk [vmem:[#allocation2 + $0x8] sm:$0xff] %vm54_vm0, %v93_v35 }
 0x167   :  { %v96_v36 = vld [vmem:[#allocation2] sm:$0xff] }
 0x168   :  { %231 = vmatprep.mubr.msk.f32.mxu0 %vm54_vm0, %v96_v36 }
 0x16b   :  { %v97_v37 = vld [vmem:[#allocation2 + $0x8] sm:$0xff] }
 0x16c   :  { %232 = vmatmul.mubr.msk.f32.vlgmr.msra.gmra.mrb[0].mxu0 %vm54_vm0, %v97_v37 }
 0x23f   :  { %v233_v39 = vpop.f32.mrb[0].mxu0 }
 0x240   :  { %v188_v40 = vadd.f32 %v233_v39, %v214_v38  ;;  %v182_v41 = vpop.f32.mrb[1].mxu0 }
 0x241   :  { %v183_v42 = vadd.f32 %v214_v38, %v182_v41 }
 0x242   :  { %193 = vst.msk [vmem:[#allocation8 + $0x8] sm:$0xff] %vm191_vm1, %v188_v40 }
 0x243   :  { %192 = vst.msk [vmem:[#allocation8] sm:$0xff] %vm191_vm1, %v183_v42 }
 0x244   :  { %306 = shalt.err (!%p303_p6)
}
 0x245   :  { %s307_s3 = scalar_lea.hbm %s419_s4, 256 }
 0x246   :  { %p308_p7 = scmp.ne.s32.totalorder %s419_s4, %s307_s3  ;;  %p311_p8 = scmp.lt.u32.totalorder %s307_s3, %s419_s4 }
 0x248   :  { %p313_p9 = pnand %p311_p8, %p308_p7 }
 0x24a   :  { %316 = shalt.err (!%p313_p9)
}
 0x24b   :  { %205 = dma.vmem_to_hbm [thread:$0]  %s200_s19, 256, %s419_s4, [#allocation5], %s324_s25, %s324_s25, %s325_s26  }
 0x24c   :  { %321 = dma.done.wait [#allocation5], 256  }
 0x24d   :  { %322 = vsyncadd [#allocation5], 4294967040 }
 0x24e   :  { %209 = vsyncpa [#allocation4], 1 }
 0x24f   :  { %210 = vsyncpa [#allocation7], 1 }
 0x250   :  { %211 = vsyncpa [#allocation5], 1 }

</bundles_post_ra>
